<compile_context>
chip_gen: v7x
topology: tpu7x:2x2x1
jax: 0.10.0
libtpu: 0.0.40
codegen_flags: <defaults>
</compile_context>

<pallas_src>
import functools

import jax
import jax.numpy as jnp
from jax import lax
from jax.experimental import pallas as pl
from jax.experimental.pallas import tpu as pltpu


def _round_up(x, m):
    return ((x + m - 1) // m) * m


def _label_gat_kernel(wcb_ref, wga_ref, bg_ref, adj_ref, out_ref, xa_sc, asrc_sc, *, h1):
    """Fused Conv1d(k=1)+ReLU -> single-head GAT, tiled over dst-row blocks of the adjacency."""
    i = pl.program_id(0)
    tm = adj_ref.shape[0]

    # Grid step 0: project every node once, keep it VMEM-resident across all dst-row tiles.
    #   wcb already holds Conv1d(k=1)(eye) + bias (== W_c^T + b_c), so only the ReLU remains.
    #   wga = [W_g^T | W_g^T a_src | W_g^T a_dst | 0-pad] (H0, H1pad): one lane-dense MXU push
    #   yields the projected features plus both attention-logit columns.
    @pl.when(i == 0)
    def _():
        h = jnp.maximum(wcb_ref[...], 0.0)                                   # (N, H0)
        xa = jnp.dot(h, wga_ref[...], preferred_element_type=jnp.float32)    # (N, H1pad)
        xa_sc[...] = xa
        # Relayout the per-src logits to a lane-major row ONCE (rank-1 MXU push); per-tile use
        # below is then a pure VPU broadcast-add instead of a K=1 matmul per tile.
        asrc_sc[...] = lax.dot_general(
            jnp.ones((8, 1), jnp.float32), xa[:, h1:h1 + 1],
            (((1,), (1,)), ((), ())), preferred_element_type=jnp.float32)    # (8, N)

    # e[d, s] = LeakyReLU(a_dst[d] + a_src[s], 0.2) for the dst rows of this tile.
    row0 = pl.multiple_of(i * tm, 8)
    xa_rows = xa_sc[pl.ds(row0, tm), :]                                      # (TM, H1pad)
    a_dst = xa_rows[:, h1 + 1:h1 + 2]                                        # (TM, 1)
    e = a_dst + asrc_sc[0:1, :]                                              # (TM, N)
    e = jnp.maximum(e, 0.2 * e)                                              # LeakyReLU(0.2)

    # Masked softmax over incoming edges.  adj is 0/1 with guaranteed self-loops, so the row max
    # is finite and exp(e - m) is already exactly 0 for masked entries (no extra mask multiply,
    # no inf arithmetic / NaN risk).
    e = e + (adj_ref[...] - 1.0) * 1e30
    m = jnp.max(e, axis=1, keepdims=True)
    p = jnp.exp(e - m)
    denom = jnp.sum(p, axis=1, keepdims=True)
    attn = p * pl.reciprocal(denom, approx=True)                             # EUP vrcp slot

    # Aggregate over incoming edges + GAT output bias.  The logit / pad lanes of xa produce
    # finite garbage in output columns >= H1, which the wrapper slices off (keeps the store
    # lane-dense and unmasked).
    out_ref[...] = (jnp.dot(attn, xa_sc[...], preferred_element_type=jnp.float32)
                    + bg_ref[...])


def prepare_label_graph(edge_index, params, *, tm_max=256):
    """One-time prep (hoisted out of the hot path): kernel-layout params + dense adjacency."""
    conv_w = jnp.asarray(params["conv_w"], jnp.float32)    # (H0, N, 1)  nn.Conv1d.weight
    conv_b = jnp.asarray(params["conv_b"], jnp.float32)    # (H0,)
    gat_w = jnp.asarray(params["gat_w"], jnp.float32)      # (H1, H0)    GATConv.lin.weight
    att_src = jnp.asarray(params["gat_att_src"], jnp.float32).reshape(-1)   # (H1,)
    att_dst = jnp.asarray(params["gat_att_dst"], jnp.float32).reshape(-1)   # (H1,)
    gat_b = jnp.asarray(params["gat_b"], jnp.float32)       # (H1,)

    h0, n, _ = conv_w.shape
    h1 = gat_w.shape[0]

    # Tiling / lane-padding geometry.
    n8 = _round_up(n, 8)
    tm = n8 if n8 <= tm_max else tm_max
    n_pad = _round_up(n8, tm)
    h1_pad = _round_up(h1 + 2, 128)           # lane-dense output / augmented-weight width

    # Conv1d(k=1)(eye) == W_c^T; fold in the bias so the kernel only does the ReLU.
    wcb = conv_w[:, :, 0].T + conv_b[None, :]                                # (N, H0)
    wcb = jnp.zeros((n_pad, h0), jnp.float32).at[:n].set(wcb)

    # Augmented, lane-padded GAT projection: two extra columns produce a_src / a_dst for free on
    # the MXU; the remaining columns are zero so everything stays a 128-multiple of lanes.
    wg_t = gat_w.T                                                           # (H0, H1)
    wg_aug = jnp.zeros((h0, h1_pad), jnp.float32)
    wg_aug = wg_aug.at[:, :h1].set(wg_t)
    wg_aug = wg_aug.at[:, h1].set(wg_t @ att_src)
    wg_aug = wg_aug.at[:, h1 + 1].set(wg_t @ att_dst)

    bg = jnp.zeros((1, h1_pad), jnp.float32).at[0, :h1].set(gat_b)

    # Dense adjacency with self-loops: adj[dst, src] = 1.  Padded rows also get a self-loop so
    # their (discarded) softmax rows stay well-defined.
    # TODO(synk): at GO scale store adj as int8 / packed mask and widen in-kernel (4x HBM+VMEM).
    adj = jnp.zeros((n_pad, n_pad), jnp.float32)
    adj = adj.at[edge_index[1], edge_index[0]].set(1.0)
    diag = jnp.arange(n_pad)
    adj = adj.at[diag, diag].set(1.0)

    arrays = dict(wcb=wcb, wg_aug=wg_aug, bg=bg, adj=adj)
    meta = dict(n=n, h0=h0, h1=h1, n_pad=n_pad, h1_pad=h1_pad, tm=tm)
    return arrays, meta


def compute_label_node_features(arrays, meta):
    """Runs the fused Pallas kernel ONCE; the result is static across forward calls."""
    n, h0, h1 = meta["n"], meta["h0"], meta["h1"]
    n_pad, h1_pad, tm = meta["n_pad"], meta["h1_pad"], meta["tm"]
    n_tiles = n_pad // tm

    cost = pl.CostEstimate(
        flops=2 * n_pad * h0 * h1_pad + 2 * n_pad * n_pad * h1_pad + 12 * n_pad * n_pad,
        transcendentals=n_pad * n_pad,
        bytes_accessed=4 * (n_pad * h0 + h0 * h1_pad + h1_pad
                            + n_pad * n_pad + n_pad * h1_pad),
    )

    node_pad = pl.pallas_call(
        functools.partial(_label_gat_kernel, h1=h1),
        out_shape=jax.ShapeDtypeStruct((n_pad, h1_pad), jnp.float32),
        grid=(n_tiles,),
        in_specs=[
            pl.BlockSpec((n_pad, h0), lambda i: (0, 0)),      # wcb    (VMEM-resident)
            pl.BlockSpec((h0, h1_pad), lambda i: (0, 0)),     # wg_aug (VMEM-resident)
            pl.BlockSpec((1, h1_pad), lambda i: (0, 0)),      # bias   (VMEM-resident)
            pl.BlockSpec((tm, n_pad), lambda i: (i, 0)),      # adj dst-row tile
        ],
        out_specs=pl.BlockSpec((tm, h1_pad), lambda i: (i, 0)),
        scratch_shapes=[
            pltpu.VMEM((n_pad, h1_pad), jnp.float32),         # projected features + logit cols
            pltpu.VMEM((8, n_pad), jnp.float32),              # src logits, lane-major
        ],
        compiler_params=pltpu.CompilerParams(
            # "arbitrary": tile 0 fills the shared projection scratch used by later tiles.
            dimension_semantics=("arbitrary",),
        ),
        cost_estimate=cost,
    )(arrays["wcb"], arrays["wg_aug"], arrays["bg"], arrays["adj"])

    return node_pad[:n, :h1]


def label_feature_extraction(node_features, protein_embedding):
    """Per-forward hot path: torch `expand` == lazy broadcast (no kernel, no HBM copies)."""
    b = protein_embedding.shape[0]
    n, h1 = node_features.shape
    return jnp.broadcast_to(node_features[None, :, :], (b, n, h1))


def _reference(edge_index, protein_embedding, params):
    """Pure-JAX reference with the original (unfused) math."""
    conv_w, conv_b = params["conv_w"], params["conv_b"]
    gat_w, gat_b = params["gat_w"], params["gat_b"]
    att_src = params["gat_att_src"].reshape(-1)
    att_dst = params["gat_att_dst"].reshape(-1)
    h0, n, _ = conv_w.shape
    h1 = gat_w.shape[0]

    eye = jnp.eye(n, dtype=jnp.float32)
    h = jnp.maximum(eye @ conv_w[:, :, 0].T + conv_b[None, :], 0.0)          # (N, H0)
    x = h @ gat_w.T                                                          # (N, H1)
    a_src = x @ att_src                                                      # (N,)
    a_dst = x @ att_dst                                                      # (N,)
    e = a_dst[:, None] + a_src[None, :]
    e = jnp.where(e >= 0.0, e, 0.2 * e)
    adj = jnp.zeros((n, n), jnp.float32).at[edge_index[1], edge_index[0]].set(1.0)
    adj = jnp.maximum(adj, jnp.eye(n, dtype=jnp.float32))
    mask = adj > 0.0
    e = jnp.where(mask, e, -jnp.inf)
    p = jnp.where(mask, jnp.exp(e - jnp.max(e, axis=1, keepdims=True)), 0.0)
    attn = p / jnp.sum(p, axis=1, keepdims=True)
    out = attn @ x + gat_b[None, :]
    b = protein_embedding.shape[0]
    return jnp.broadcast_to(out[None, :, :], (b, n, h1))


if __name__ == "__main__":
    # small synthetic shapes consistent with the module structure
    N_CLASSES = 16   # embed_channels (class_length[ont], shrunk)
    H0, H1 = 32, 64  # hidden_channels
    B, D = 2, 8      # protein_embedding batch / dim
    E = 40           # number of label-relationship edges

    key = jax.random.PRNGKey(0)
    k = jax.random.split(key, 8)
    params = {
        "conv_w": 0.1 * jax.random.normal(k[0], (H0, N_CLASSES, 1), jnp.float32),
        "conv_b": 0.1 * jax.random.normal(k[1], (H0,), jnp.float32),
        "gat_w": 0.1 * jax.random.normal(k[2], (H1, H0), jnp.float32),
        "gat_att_src": 0.1 * jax.random.normal(k[3], (1, 1, H1), jnp.float32),
        "gat_att_dst": 0.1 * jax.random.normal(k[4], (1, 1, H1), jnp.float32),
        "gat_b": 0.1 * jax.random.normal(k[5], (H1,), jnp.float32),
    }
    edge_index = jax.random.randint(k[6], (2, E), 0, N_CLASSES, dtype=jnp.int32)
    protein_embedding = jax.random.normal(k[7], (B, D), jnp.float32)

    # One-time prep + one-time Pallas kernel run (node features are static per graph/params).
    arrays, meta = prepare_label_graph(edge_index, params)
    node_features = jax.block_until_ready(compute_label_node_features(arrays, meta))

    # Per-forward path: just the lazy broadcast (kernel removed from the hot loop).
    out = jax.block_until_ready(label_feature_extraction(node_features, protein_embedding))
    assert out.shape == (B, N_CLASSES, H1), out.shape

    ref = jax.block_until_ready(_reference(edge_index, protein_embedding, params))
    # Tolerance loosened vs the f32 reference for pl.reciprocal(approx=True) (~2^-12 rel error).
    assert jnp.allclose(out, ref, atol=2e-3, rtol=2e-3), float(jnp.max(jnp.abs(out - ref)))

    print("KERNEL_OK")
</pallas_src>

<mosaic_0001>
module attributes {stable_mosaic.version = 11 : i64} {
  func.func @_label_gat_kernel(%arg0: i32, %arg1: memref<16x32xf32, #tpu.memory_space<vmem>>, %arg2: memref<32x128xf32, #tpu.memory_space<vmem>>, %arg3: memref<1x128xf32, #tpu.memory_space<vmem>>, %arg4: memref<16x16xf32, #tpu.memory_space<vmem>>, %arg5: memref<16x128xf32, #tpu.memory_space<vmem>>, %arg6: memref<16x128xf32, #tpu.memory_space<vmem>>, %arg7: memref<8x16xf32, #tpu.memory_space<vmem>>) attributes {dimension_semantics = [#tpu.dimension_semantics<arbitrary>], iteration_bounds = array<i64: 1>, scalar_prefetch = 0 : i64, scratch_operands = 2 : i64, tpu.core_type = #tpu.core_type<tc>, window_params = [{pipeline_mode = #tpu.pipeline_mode<synchronous>, transform_indices = @transform_0, window_bounds = array<i64: 16, 32>}, {pipeline_mode = #tpu.pipeline_mode<synchronous>, transform_indices = @transform_1, window_bounds = array<i64: 32, 128>}, {pipeline_mode = #tpu.pipeline_mode<synchronous>, transform_indices = @transform_2, window_bounds = array<i64: 1, 128>}, {transform_indices = @transform_3, window_bounds = array<i64: 16, 16>}, {transform_indices = @transform_4, window_bounds = array<i64: 16, 128>}]} {
    %c0_i32 = arith.constant 0 : i32
    %0 = arith.cmpi eq, %arg0, %c0_i32 : i32
    %1 = arith.extui %0 : i1 to i32
    %c0_i32_0 = arith.constant 0 : i32
    %2 = arith.cmpi ne, %1, %c0_i32_0 : i32
    scf.if %2 {
      %c0_16 = arith.constant 0 : index
      %c0_17 = arith.constant 0 : index
      %37 = vector.load %arg1[%c0_16, %c0_17] : memref<16x32xf32, #tpu.memory_space<vmem>>, vector<16x32xf32>
      %cst_18 = arith.constant 0.000000e+00 : f32
      %38 = vector.broadcast %cst_18 : f32 to vector<16x32xf32>
      %39 = arith.maximumf %37, %38 : vector<16x32xf32>
      %c0_19 = arith.constant 0 : index
      %c0_20 = arith.constant 0 : index
      %40 = vector.load %arg2[%c0_19, %c0_20] : memref<32x128xf32, #tpu.memory_space<vmem>>, vector<32x128xf32>
      %cst_21 = arith.constant dense<0.000000e+00> : vector<16x128xf32>
      %41 = tpu.matmul %39, %40, %cst_21 {dimension_numbers = #tpu.dot_dimension_numbers<[1], [0], [0], [1], [0, 0, 1, 1], [], []>} : vector<16x32xf32>, vector<32x128xf32>, vector<16x128xf32> -> vector<16x128xf32>
      %c0_22 = arith.constant 0 : index
      %c0_23 = arith.constant 0 : index
      %42 = vector.load %arg6[%c0_22, %c0_23] : memref<16x128xf32, #tpu.memory_space<vmem>>, vector<16x128xf32>
      tpu.vector_store %arg6[%c0_22, %c0_23], %41 {strides = array<i32>} : memref<16x128xf32, #tpu.memory_space<vmem>>, vector<16x128xf32>,
      %cst_24 = arith.constant 1.000000e+00 : f32
      %43 = vector.broadcast %cst_24 : f32 to vector<8x1xf32>
      %44 = vector.extract_strided_slice %41 {offsets = [0, 64], sizes = [16, 1], strides = [1, 1]} : vector<16x128xf32> to vector<16x1xf32>
      %cst_25 = arith.constant dense<0.000000e+00> : vector<8x16xf32>
      %45 = tpu.matmul %43, %44, %cst_25 {dimension_numbers = #tpu.dot_dimension_numbers<[1], [1], [0], [0], [0, 0, 1, 0], [], []>} : vector<8x1xf32>, vector<16x1xf32>, vector<8x16xf32> -> vector<8x16xf32>
      %c0_26 = arith.constant 0 : index
      %c0_27 = arith.constant 0 : index
      %46 = vector.load %arg7[%c0_26, %c0_27] : memref<8x16xf32, #tpu.memory_space<vmem>>, vector<8x16xf32>
      tpu.vector_store %arg7[%c0_26, %c0_27], %45 {strides = array<i32>} : memref<8x16xf32, #tpu.memory_space<vmem>>, vector<8x16xf32>,
    } else {
    }
    %c16_i32 = arith.constant 16 : i32
    %3 = arith.muli %arg0, %c16_i32 : i32
    %4 = tpu.assume_multiple %3, 8 : i32
    %5 = arith.index_cast %4 : i32 to index
    %c0 = arith.constant 0 : index
    %6 = vector.load %arg6[%5, %c0] : memref<16x128xf32, #tpu.memory_space<vmem>>, vector<16x128xf32>
    %7 = vector.extract_strided_slice %6 {offsets = [0, 65], sizes = [16, 1], strides = [1, 1]} : vector<16x128xf32> to vector<16x1xf32>
    %c0_1 = arith.constant 0 : index
    %c0_2 = arith.constant 0 : index
    %8 = vector.load %arg7[%c0_1, %c0_2] : memref<8x16xf32, #tpu.memory_space<vmem>>, vector<1x16xf32>
    %9 = vector.broadcast %7 : vector<16x1xf32> to vector<16x16xf32>
    %10 = vector.broadcast %8 : vector<1x16xf32> to vector<16x16xf32>
    %11 = arith.addf %9, %10 : vector<16x16xf32>
    %cst = arith.constant 2.000000e-01 : f32
    %12 = vector.broadcast %cst : f32 to vector<16x16xf32>
    %13 = arith.mulf %12, %11 : vector<16x16xf32>
    %14 = arith.maximumf %11, %13 : vector<16x16xf32>
    %c0_3 = arith.constant 0 : index
    %c0_4 = arith.constant 0 : index
    %15 = vector.load %arg4[%c0_3, %c0_4] : memref<16x16xf32, #tpu.memory_space<vmem>>, vector<16x16xf32>
    %cst_5 = arith.constant 1.000000e+00 : f32
    %16 = vector.broadcast %cst_5 : f32 to vector<16x16xf32>
    %17 = arith.subf %15, %16 : vector<16x16xf32>
    %cst_6 = arith.constant 1.000000e+30 : f32
    %18 = vector.broadcast %cst_6 : f32 to vector<16x16xf32>
    %19 = arith.mulf %17, %18 : vector<16x16xf32>
    %20 = arith.addf %14, %19 : vector<16x16xf32>
    %cst_7 = arith.constant dense<0xFF800000> : vector<16xf32>
    %21 = vector.multi_reduction <maximumf>, %20, %cst_7 [1] : vector<16x16xf32> to vector<16xf32>
    %22 = vector.shape_cast %21 : vector<16xf32> to vector<16x1xf32>
    %23 = vector.broadcast %22 : vector<16x1xf32> to vector<16x16xf32>
    %24 = arith.subf %20, %23 : vector<16x16xf32>
    %25 = math.exp %24 : vector<16x16xf32>
    %cst_8 = arith.constant dense<0.000000e+00> : vector<16xf32>
    %26 = vector.multi_reduction <add>, %25, %cst_8 [1] : vector<16x16xf32> to vector<16xf32>
    %27 = vector.shape_cast %26 : vector<16xf32> to vector<16x1xf32>
    %28 = tpu.reciprocal %27 {approx = true} : vector<16x1xf32> -> vector<16x1xf32>
    %29 = vector.broadcast %28 : vector<16x1xf32> to vector<16x16xf32>
    %30 = arith.mulf %25, %29 : vector<16x16xf32>
    %c0_9 = arith.constant 0 : index
    %c0_10 = arith.constant 0 : index
    %31 = vector.load %arg6[%c0_9, %c0_10] : memref<16x128xf32, #tpu.memory_space<vmem>>, vector<16x128xf32>
    %cst_11 = arith.constant dense<0.000000e+00> : vector<16x128xf32>
    %32 = tpu.matmul %30, %31, %cst_11 {dimension_numbers = #tpu.dot_dimension_numbers<[1], [0], [0], [1], [0, 0, 1, 1], [], []>} : vector<16x16xf32>, vector<16x128xf32>, vector<16x128xf32> -> vector<16x128xf32>
    %c0_12 = arith.constant 0 : index
    %c0_13 = arith.constant 0 : index
    %33 = vector.load %arg3[%c0_12, %c0_13] : memref<1x128xf32, #tpu.memory_space<vmem>>, vector<1x128xf32>
    %34 = vector.broadcast %33 : vector<1x128xf32> to vector<16x128xf32>
    %35 = arith.addf %32, %34 : vector<16x128xf32>
    %c0_14 = arith.constant 0 : index
    %c0_15 = arith.constant 0 : index
    %36 = vector.load %arg5[%c0_14, %c0_15] : memref<16x128xf32, #tpu.memory_space<vmem>>, vector<16x128xf32>
    tpu.vector_store %arg5[%c0_14, %c0_15], %35 {strides = array<i32>} : memref<16x128xf32, #tpu.memory_space<vmem>>, vector<16x128xf32>,
    return
  }
  func.func @transform_0(%arg0: i32) -> (i32, i32) {
    %c0_i32 = arith.constant 0 : i32
    %c0_i32_0 = arith.constant 0 : i32
    %c0_i32_1 = arith.constant 0 : i32
    return %c0_i32, %c0_i32_0 : i32, i32
  }
  func.func @transform_1(%arg0: i32) -> (i32, i32) {
    %c0_i32 = arith.constant 0 : i32
    %c0_i32_0 = arith.constant 0 : i32
    %c0_i32_1 = arith.constant 0 : i32
    return %c0_i32, %c0_i32_0 : i32, i32
  }
  func.func @transform_2(%arg0: i32) -> (i32, i32) {
    %c0_i32 = arith.constant 0 : i32
    %c0_i32_0 = arith.constant 0 : i32
    %c0_i32_1 = arith.constant 0 : i32
    return %c0_i32, %c0_i32_0 : i32, i32
  }
  func.func @transform_3(%arg0: i32) -> (i32, i32) {
    %c0_i32 = arith.constant 0 : i32
    %c0_i32_0 = arith.constant 0 : i32
    return %arg0, %c0_i32 : i32, i32
  }
  func.func @transform_4(%arg0: i32) -> (i32, i32) {
    %c0_i32 = arith.constant 0 : i32
    %c0_i32_0 = arith.constant 0 : i32
    return %arg0, %c0_i32 : i32, i32
  }
}

</mosaic_0001>

<bundles_post_ra>
// kernel: tpu_custom_call.1
= control target key start
LH: loop header
LB: loop body
LE: loop exit
PB: predicated region body
PF: predicated region fallthrough
CT: control target
= control target key end

     0   :  { %9 = vsyncpa [#allocation5], 0  ;;  %s707_s0 = inlined_call_operand.hbm [shape: f32[16,32], index: 0, kind: input, shape index: {}]   ;;  %s708_s1 = inlined_call_operand.hbm [shape: f32[32,128], index: 1, kind: input, shape index: {}]   ;;  %s709_s2 = inlined_call_operand.vmem [shape: f32[1,128], index: 2, kind: input, shape index: {}]   ;;  %s710_s3 = inlined_call_operand.hbm [shape: f32[16,16], index: 3, kind: input, shape index: {}]   ;;  %s711_s4 = inlined_call_operand.hbm [shape: f32[16,128], index: 4, kind: output, shape index: {}]  }
   0x1   :  { %10 = vsyncpa [#allocation8], 0 }
   0x2   :  { %11 = vsyncpa [#allocation6], 0  ;;  %s593_s15 = smov [#allocation7]   ;;  %s594_s17 = smov [#allocation4]  }
   0x3   :  { %s29_s16 = sshll.u32 %s593_s15, 4  ;;  %s17_s18 = sshll.u32 %s594_s17, 4  ;;  %s30_s16 = int_to_ptr.vmem [resolvable:$true] %s29_s16  ;;  %s630_s18 = int_to_ptr.vmem [resolvable:$true] %s17_s18 }
   0x4   :  { %s499_s21 = scalar_lea.hbm %s708_s1, 512 }
   0x5   :  { %p500_p0 = scmp.ne.s32.totalorder %s708_s1, %s499_s21  ;;  %p503_p1 = scmp.lt.u32.totalorder %s499_s21, %s708_s1 }
   0x7   :  { %p505_p2 = pnand %p503_p1, %p500_p0 }
   0x9   :  { %508 = shalt.err (!%p505_p2)
}
   0xa   :  { %s509_s26 = scalar_lea.vmem %s30_s16, 512  ;;  %p514_p4 = scmp.lt.s32.totalorder %s30_s16, %s30_s16 }
   0xb   :  { %p510_p3 = scmp.ne.s32.totalorder %s30_s16, %s509_s26  ;;  %p515_p5 = scmp.lt.s32.totalorder %s509_s26, %s509_s26 }
   0xd   :  { %p516_p6 = por %p515_p5, %p514_p4 }
   0xf   :  { %p517_p7 = pnand %p516_p6, %p510_p3 }
  0x11   :  { %520 = shalt.err (!%p517_p7)
}
  0x12   :  { %s595_s27 = smov 128   ;;  %s596_s28 = smov 8  }
  0x13   :  { %35 = dma.hbm_to_vmem [thread:$0]  %s708_s1, 512, %s30_s16, [#allocation8], %s595_s27, %s595_s27, %s596_s28  }
  0x14   :  { %s521_s7 = scalar_lea.hbm %s707_s0, 256 }
  0x15   :  { %p522_p8 = scmp.ne.s32.totalorder %s707_s0, %s521_s7  ;;  %p525_p9 = scmp.lt.u32.totalorder %s521_s7, %s707_s0 }
  0x17   :  { %p527_p10 = pnand %p525_p9, %p522_p8 }
  0x19   :  { %530 = shalt.err (!%p527_p10)
}
  0x1a   :  { %s531_s12 = scalar_lea.vmem %s630_s18, 256  ;;  %p536_p12 = scmp.lt.s32.totalorder %s630_s18, %s630_s18 }
  0x1b   :  { %p532_p11 = scmp.ne.s32.totalorder %s630_s18, %s531_s12  ;;  %p537_p13 = scmp.lt.s32.totalorder %s531_s12, %s531_s12 }
  0x1d   :  { %p538_p0 = por %p537_p13, %p536_p12 }
  0x1f   :  { %p539_p1 = pnand %p538_p0, %p532_p11 }
  0x21   :  { %542 = shalt.err (!%p539_p1)
}
  0x22   :  { %23 = dma.hbm_to_vmem [thread:$0]  %s707_s0, 256, %s630_s18, [#allocation5], %s595_s27, %s595_s27, %s596_s28  }
  0x23   :  { %s597_s14 = smov [#allocation9]   ;;  %s543_s19 = scalar_lea.hbm %s710_s3, 256 }
  0x24   :  { %s43_s15 = sshll.u32 %s597_s14, 4  ;;  %p544_p2 = scmp.ne.s32.totalorder %s710_s3, %s543_s19  ;;  %s44_s15 = int_to_ptr.vmem [resolvable:$true] %s43_s15 }
  0x25   :  { %p547_p3 = scmp.lt.u32.totalorder %s543_s19, %s710_s3 }
  0x27   :  { %p549_p4 = pnand %p547_p3, %p544_p2 }
  0x29   :  { %552 = shalt.err (!%p549_p4)
}
  0x2a   :  { %s553_s24 = scalar_lea.vmem %s44_s15, 256  ;;  %p558_p6 = scmp.lt.s32.totalorder %s44_s15, %s44_s15 }
  0x2b   :  { %p554_p5 = scmp.ne.s32.totalorder %s44_s15, %s553_s24  ;;  %p559_p7 = scmp.lt.s32.totalorder %s553_s24, %s553_s24 }
  0x2d   :  { %p560_p8 = por %p559_p7, %p558_p6 }
  0x2f   :  { %p561_p9 = pnand %p560_p8, %p554_p5 }
  0x31   :  { %564 = shalt.err (!%p561_p9)
}
  0x32   :  { %49 = dma.hbm_to_vmem [thread:$0]  %s710_s3, 256, %s44_s15, [#allocation8], %s595_s27, %s595_s27, %s596_s28  }
  0x33   :  { %587 = dma.done.wait [#allocation5], 256  }
  0x34   :  { %588 = vsyncadd [#allocation5], 4294967040 }
  0x35   :  { %589 = dma.done.wait [#allocation8], 768  }
  0x36   :  { %590 = vsyncadd [#allocation8], 4294966528  ;;  %v598_v0 = vmov 65   ;;  %v67_v1 = vld [vmem:[#allocation7] sm:$0xff]  ;;  %v68_v2 = vld [vmem:[#allocation7 + $0x8] sm:$0xff]  ;;  %vm71_vm0 = vcmask 261120  }
  0x37   :  { %490 = vset.pattern.permute.xlu1 %v598_v0  ;;  %489 = vset.pattern.permute.xlu0 %v598_v0  ;;  %v69_v3 = vld [vmem:[#allocation7 + $0x10] sm:$0xff]  ;;  %v456_v4 = vpack.c.bf16 %v68_v2, %v67_v1  ;;  %v70_v5 = vld [vmem:[#allocation7 + $0x18] sm:$0xff]  ;;  %v599_v11 = vmov 0.0|0.0   ;;  %vm600_vm1 = vmmov 0   ;;  %v601_v14 = vmov 0.0   ;;  %s602_s3 = smov 64  }
  0x38   :  { %v63_v6 = vld [vmem:[#allocation4] sm:$0xff]  ;;  %v460_v7 = vpack.c.bf16 %v70_v5, %v69_v3  ;;  %v64_v9 = vld [vmem:[#allocation4 + $0x8] sm:$0xff]  ;;  %464 = vmatprep.subr.bf16.mxu1 %v599_v11  ;;  %446 = vmatprep.mubr.msk.f32.mxu1 %vm600_vm1, %v601_v14  ;;  %vm161_vm2 = vcmask 7168   ;;  %v603_v21 = vmov 1.0   ;;  %vm239_vm4 = vcmask 130048   ;;  %v267_v24 = vld [vmem:[#allocation9 + $0x8] sm:$0xff] }
  0x39   :  { %v65_v8 = vmax.f32 %v63_v6, 0.0  ;;  %457 = vmatprep.subr.bf16.mxu0 %v456_v4  ;;  %v66_v10 = vmax.f32 %v64_v9, 0.0  ;;  %vm466_vm3 = vmpackc.low %vm161_vm2, %vm161_vm2  ;;  %v266_v25 = vld [vmem:[#allocation9] sm:$0xff]  ;;  %v414_v26 = vadd.f32 -1.0, %v267_v24  ;;  %v415_v59 = vld [vmem:[%s709_s2] ss:$0 sm:$0xff] }
  0x3a   :  { %459 = vmatpush3.bf16.msra.mxu0 %v456_v4  ;;  %v413_v27 = vadd.f32 -1.0, %v266_v25  ;;  %s604_s29 = smov [#allocation10]  }
  0x3b   :  { %439 = vmatprep.mubr.msk.f32.mxu0 %vm71_vm0, %v65_v8  ;;  %461 = vmatprep.subr.bf16.mxu0 %v460_v7  ;;  %v271_v33 = vmul.f32 1e+30, %v414_v26  ;;  %s394_s30 = sshll.u32 %s604_s29, 4  ;;  %s395_s30 = int_to_ptr.vmem [resolvable:$true] %s394_s30 }
  0x3c   :  { %v270_v36 = vmul.f32 1e+30, %v413_v27  ;;  %s565_s5 = scalar_lea.vmem %s395_s30, 256  ;;  %p570_p11 = scmp.lt.s32.totalorder %s395_s30, %s395_s30 }
  0x3d   :  { %p566_p10 = scmp.ne.s32.totalorder %s395_s30, %s565_s5  ;;  %p571_p12 = scmp.lt.s32.totalorder %s565_s5, %s565_s5 }
  0x3e   :  { %463 = vmatpush3.bf16.msra.mxu0 %v460_v7 }
  0x3f   :  { %p572_p13 = por %p571_p12, %p570_p11 }
  0x41   :  { %440 = vmatmul.mubr.msk.f32.vlgmr.msra.gmra.mrb[0].mxu0 %vm71_vm0, %v66_v10  ;;  %p573_p0 = pnand %p572_p13, %p566_p10 }
 0x114   :  { %v441_v12 = vpop.f32.mrb[0].mxu0 }
 0x115   :  { %253 = vperm.xlu1 %490, %v441_v12   ;;  %v144_v13 = vpop.f32.mrb[1].mxu0 }
 0x116   :  { %v468_v15 = vpack.c.bf16 %v441_v12, %v144_v13  ;;  %v484_v16 = vpack.i.bf16 %v441_v12, %v144_v13 }
 0x118   :  { %485 = vrot.lane.b32.xlu0 %v484_v16, %s602_s3  ;;  %469 = vmatprep.subr.bf16.mxu0 %v468_v15 }
 0x119   :  { %471 = vmatpush3.bf16.msra.mxu0 %v468_v15 }
 0x11c   :  { %248 = vperm.xlu0 %489, %v144_v13  }
 0x18a   :  { %v486_v17 = vpop.permute.xlu0 %485 }
 0x18b   :  { %v488_v18 = vunpack.i.h.bf16 %v486_v17  ;;  %v487_v19 = vunpack.i.l.bf16 %v486_v17 }
 0x18d   :  { %v465_v20 = vpack.c.bf16 %v488_v18, %v487_v19 }
 0x18f   :  { %467 = vmatpush3.bf16.xpose.msk.msra.mxu1 %vm466_vm3, %v465_v20 }
 0x194   :  { %v254_v28 = vpop.permute.xlu1 %253 }
 0x196   :  { %447 = vmatmul.mubr.msk.f32.vlgmr.msra.gmra.mrb[0].mxu1 %vm161_vm2, %v603_v21 }
 0x19b   :  { %v249_v29 = vpop.permute.xlu0 %248 }
 0x269   :  { %v235_v22 = vpop.f32.mrb[0].mxu1 }
 0x26a   :  { %240 = vst.msk [vmem:[#allocation3] sm:$0xff] %vm239_vm4, %v235_v22  ;;  %v448_v23 = vpop.f32.mrb[1].mxu1 }
 0x271   :  { %v412_v30 = vld [vmem:[#allocation3] ss:$0 sm:$0xff] }
 0x272   :  { %v261_v31 = vadd.f32 %v412_v30, %v254_v28  ;;  %v260_v32 = vadd.f32 %v412_v30, %v249_v29 }
 0x274   :  { %v263_v34 = vmul.f32 0.2, %v261_v31  ;;  %v262_v35 = vmul.f32 0.2, %v260_v32 }
 0x276   :  { %v265_v37 = vmax.f32 %v261_v31, %v263_v34  ;;  %v264_v38 = vmax.f32 %v260_v32, %v262_v35 }
 0x278   :  { %v273_v39 = vadd.f32 %v271_v33, %v265_v37  ;;  %v272_v40 = vadd.f32 %v270_v36, %v264_v38 }
 0x27a   :  { %v278_v41 = vsel %vm239_vm4, %v273_v39, -inf  ;;  %v275_v42 = vsel %vm239_vm4, %v272_v40, -inf }
 0x27b   :  { %279 = vmax.xlane.f32.xlu0 %v278_v41  ;;  %276 = vmax.xlane.f32.xlu1 %v275_v42 }
 0x308   :  { %v280_v43 = vpop.xlane.xlu0 %279  ;;  %v277_v44 = vpop.xlane.xlu1 %276 }
 0x309   :  { %v282_v45 = vsub.f32 %v273_v39, %v280_v43  ;;  %v281_v46 = vsub.f32 %v272_v40, %v277_v44 }
 0x30b   :  { %v285_v47 = vmul.f32 1.442695, %v282_v45  ;;  %v283_v48 = vmul.f32 1.442695, %v281_v46 }
 0x30d   :  { %491 = vpow2.f32 %v285_v47 }
 0x30e   :  { %493 = vpow2.f32 %v283_v48 }
 0x317   :  { %v492_v49 = vpop.eup %491 }
 0x318   :  { %v494_v50 = vpop.eup %493  ;;  %v290_v51 = vsel %vm239_vm4, %v492_v49, 0.0 }
 0x319   :  { %291 = vadd.xlane.f32.xlu0 %v290_v51  ;;  %v287_v52 = vsel %vm239_vm4, %v494_v50, 0.0 }
 0x31a   :  { %288 = vadd.xlane.f32.xlu1 %v287_v52 }
 0x3a6   :  { %v292_v53 = vpop.xlane.xlu0 %291 }
 0x3a7   :  { %495 = vrcp.f32 %v292_v53  ;;  %v289_v54 = vpop.xlane.xlu1 %288 }
 0x3a8   :  { %497 = vrcp.f32 %v289_v54 }
 0x3b1   :  { %v496_v55 = vpop.eup %495 }
 0x3b2   :  { %v498_v56 = vpop.eup %497  ;;  %v296_v57 = vmul.f32 %v496_v55, %v492_v49 }
 0x3b3   :  { %v295_v58 = vmul.f32 %v498_v56, %v494_v50 }
 0x3b5   :  { %453 = vmatprep.mubr.msk.f32.mxu0 %vm239_vm4, %v295_v58 }
 0x3b6   :  { %454 = vmatmul.mubr.msk.f32.vlgmr.msra.gmra.mrb[2].mxu0 %vm239_vm4, %v296_v57 }
 0x489   :  { %v455_v60 = vpop.f32.mrb[2].mxu0 }
 0x48a   :  { %v384_v61 = vadd.f32 %v455_v60, %v415_v59  ;;  %v378_v62 = vpop.f32.mrb[3].mxu0 }
 0x48b   :  { %v379_v63 = vadd.f32 %v415_v59, %v378_v62 }
 0x48c   :  { %388 = vst [vmem:[#allocation10 + $0x8] sm:$0xff] %v384_v61 }
 0x48d   :  { %387 = vst [vmem:[#allocation10] sm:$0xff] %v379_v63 }
 0x48e   :  { %576 = shalt.err (!%p573_p0)
}
 0x48f   :  { %s577_s2 = scalar_lea.hbm %s711_s4, 256 }
 0x490   :  { %p578_p1 = scmp.ne.s32.totalorder %s711_s4, %s577_s2  ;;  %p581_p2 = scmp.lt.u32.totalorder %s577_s2, %s711_s4 }
 0x492   :  { %p583_p3 = pnand %p581_p2, %p578_p1 }
 0x494   :  { %586 = shalt.err (!%p583_p3)
}
 0x495   :  { %400 = dma.vmem_to_hbm [thread:$0]  %s395_s30, 256, %s711_s4, [#allocation6], %s595_s27, %s595_s27, %s596_s28  }
 0x496   :  { %591 = dma.done.wait [#allocation6], 256  }
 0x497   :  { %592 = vsyncadd [#allocation6], 4294967040 }
 0x498   :  { %404 = vsyncpa [#allocation5], 1 }
 0x499   :  { %405 = vsyncpa [#allocation8], 1 }
 0x49a   :  { %406 = vsyncpa [#allocation6], 1 }

</bundles_post_ra>
